<compile_context>
chip_gen: v5e
topology: v5e:2x2
jax: 0.10.0
libtpu: 0.0.40
codegen_flags: <defaults>
</compile_context>

<pallas_src>
import numpy as np
import jax
import jax.numpy as jnp
from jax.experimental import pallas as pl
from jax.experimental.pallas import tpu as pltpu

NUM_BINS = 8   # cosine / histogram channels
NUM_GRAD = 2   # image-gradient channels (gx, gy)


def _round_up(a, m):
    return ((a + m - 1) // m) * m


def _histogram_kernel(x_ref, o_ref):
    # x_ref: (N, 10, T) float32   o_ref: (N, 8, T) float32
    x = x_ref[...]
    n = x.shape[0]
    T = x.shape[-1]

    cos = x[:, :NUM_BINS, :]                 # (N, 8, T)
    gx = x[:, NUM_BINS, :]                   # (N, T)
    gy = x[:, NUM_BINS + 1, :]               # (N, T)
    norms = jnp.sqrt(gx * gx + gy * gy)      # (N, T)  == torch.norm(im_grads, dim=1)

    # Per-pixel argmax over the 8 cosine channels (first-max wins on ties, like
    # torch.argmax).  Unrolled over the 8 bins: pure VPU elementwise work.
    best_val = cos[:, 0, :]                                  # (N, T)
    best_idx = jnp.zeros(best_val.shape, dtype=jnp.int32)    # (N, T)
    for c in range(1, NUM_BINS):
        v = cos[:, c, :]
        take = v > best_val
        best_val = jnp.where(take, v, best_val)
        best_idx = jnp.where(take, jnp.int32(c), best_idx)

    # Scatter built directly as a full (8, T) slab: one iota + N wheres,
    # full 8-sublane vregs, no cross-sublane concatenate.
    # Duplicate bins: later batch index k overwrites the earlier one
    # (serial write order of the PyTorch advanced-index assignment).
    bins = jax.lax.broadcasted_iota(jnp.int32, (NUM_BINS, T), 0)      # (8, T)
    hist = jnp.zeros((NUM_BINS, T), dtype=x.dtype)
    for k in range(n):
        hist = jnp.where(best_idx[k][None, :] == bins,
                         norms[k][None, :], hist)

    # Every output batch gets the same histogram; store per batch instead of
    # materializing an (N, 8, T) broadcast intermediate in vregs.
    hist = hist.astype(o_ref.dtype)
    for k in range(n):
        o_ref[k] = hist


def histogram_layer(x, *, tile=2048):
    """x: (N, 10, H, W) float32 (NCHW, same as the PyTorch module). Returns (N, 8, H, W)."""
    N, C, H, W = x.shape
    assert C == NUM_BINS + NUM_GRAD, "expected 8 cosine + 2 gradient channels"
    S = H * W
    xf = x.reshape(N, C, S)

    # Pad the flattened spatial axis to a multiple of 128: keeps output stores
    # lane-dense (unmasked vst) and preserves a real multi-step pipeline.
    # Padded pixels are all-zero -> they write 0 into bin 0 and are sliced off.
    S_pad = _round_up(S, 128)
    if S_pad != S:
        xf = jnp.pad(xf, ((0, 0), (0, 0), (0, S_pad - S)))

    # Per-block VMEM cost (double buffered); input sublane dim 10 pads to 16.
    def _block_bytes(t):
        in_blk = N * _round_up(C, 8) * t * 4
        out_blk = N * NUM_BINS * t * 4
        return 2 * (in_blk + out_blk)

    # Tile: the largest multiple of 128 that divides S_pad, is <= requested
    # tile, and keeps double-buffered blocks under a conservative budget
    # (sized against v7x's 64 MiB-per-TC VMEM).
    budget = 24 * 1024 * 1024
    t = max(128, (min(tile, S_pad) // 128) * 128)
    while t > 128 and (S_pad % t != 0 or _block_bytes(t) > budget):
        t -= 128

    # Explicit scoped-VMEM limit (defaults: 16 MiB v5e / 32 MiB v6e,v7x),
    # capped well below v7x's 64 MiB physical VMEM.
    vmem_limit = int(min(48 * 1024 * 1024,
                         max(16 * 1024 * 1024, _block_bytes(t) + (2 << 20))))

    out = pl.pallas_call(
        _histogram_kernel,
        out_shape=jax.ShapeDtypeStruct((N, NUM_BINS, S_pad), x.dtype),
        grid=(S_pad // t,),
        in_specs=[pl.BlockSpec((N, C, t), lambda i: (0, 0, i))],
        out_specs=pl.BlockSpec((N, NUM_BINS, t), lambda i: (0, 0, i)),
        compiler_params=pltpu.CompilerParams(
            dimension_semantics=("parallel",),
            vmem_limit_bytes=vmem_limit,
        ),
    )(xf)

    if S_pad != S:
        out = out[:, :, :S]
    return out.reshape(N, NUM_BINS, H, W)


def _reference(x_np):
    """Pure-NumPy transcription of the PyTorch forward (serial write order)."""
    N, C, H, W = x_np.shape
    cos = x_np[:, :NUM_BINS]
    grads = x_np[:, NUM_BINS:]
    norms = np.sqrt((grads ** 2).sum(axis=1))
    out = np.zeros_like(cos)
    for i in range(H):
        for j in range(W):
            ind = np.argmax(cos[:, :, i, j], axis=1)          # (N,), first-max wins
            for b in range(N):
                for k in range(N):                            # duplicates: last k wins
                    out[b, ind[k], i, j] = norms[k, i, j]     # old value is 0
    return out


if __name__ == "__main__":
    key = jax.random.PRNGKey(0)

    # Main test: lane-aligned spatial size.
    x = jax.random.normal(key, (2, NUM_BINS + NUM_GRAD, 16, 16), dtype=jnp.float32)
    y = histogram_layer(x)
    jax.block_until_ready(y)
    assert y.shape == (2, NUM_BINS, 16, 16) and y.dtype == jnp.float32
    np.testing.assert_allclose(np.asarray(y), _reference(np.asarray(x)),
                               rtol=1e-5, atol=1e-5)

    # Second test: non-128-multiple spatial size (exercises padding path) and
    # deliberate argmax ties (coarsely quantized cosine channels).
    k2 = jax.random.PRNGKey(1)
    x2 = jax.random.normal(k2, (3, NUM_BINS + NUM_GRAD, 9, 7), dtype=jnp.float32)
    x2 = x2.at[:, :NUM_BINS].set(jnp.round(x2[:, :NUM_BINS] * 2.0) / 2.0)
    y2 = histogram_layer(x2)
    jax.block_until_ready(y2)
    assert y2.shape == (3, NUM_BINS, 9, 7) and y2.dtype == jnp.float32
    np.testing.assert_allclose(np.asarray(y2), _reference(np.asarray(x2)),
                               rtol=1e-5, atol=1e-5)

    print("KERNEL_OK")
</pallas_src>

<mosaic_0001>
module attributes {stable_mosaic.version = 11 : i64} {
  func.func @_histogram_kernel(%arg0: i32, %arg1: memref<2x10x256xf32, #tpu.memory_space<vmem>>, %arg2: memref<2x8x256xf32, #tpu.memory_space<vmem>>) attributes {dimension_semantics = [#tpu.dimension_semantics<parallel>], iteration_bounds = array<i64: 1>, scalar_prefetch = 0 : i64, scratch_operands = 0 : i64, tpu.core_type = #tpu.core_type<tc>, window_params = [{transform_indices = @transform_0, window_bounds = array<i64: 2, 10, 256>}, {transform_indices = @transform_1, window_bounds = array<i64: 2, 8, 256>}]} {
    %c0 = arith.constant 0 : index
    %c0_0 = arith.constant 0 : index
    %c0_1 = arith.constant 0 : index
    %0 = vector.load %arg1[%c0, %c0_0, %c0_1] : memref<2x10x256xf32, #tpu.memory_space<vmem>>, vector<2x10x256xf32>
    %1 = vector.extract_strided_slice %0 {offsets = [0, 0, 0], sizes = [2, 8, 256], strides = [1, 1, 1]} : vector<2x10x256xf32> to vector<2x8x256xf32>
    %2 = vector.extract_strided_slice %0 {offsets = [0, 8, 0], sizes = [2, 1, 256], strides = [1, 1, 1]} : vector<2x10x256xf32> to vector<2x1x256xf32>
    %3 = vector.shape_cast %2 : vector<2x1x256xf32> to vector<2x256xf32>
    %4 = vector.extract_strided_slice %0 {offsets = [0, 9, 0], sizes = [2, 1, 256], strides = [1, 1, 1]} : vector<2x10x256xf32> to vector<2x1x256xf32>
    %5 = vector.shape_cast %4 : vector<2x1x256xf32> to vector<2x256xf32>
    %6 = arith.mulf %3, %3 : vector<2x256xf32>
    %7 = arith.mulf %5, %5 : vector<2x256xf32>
    %8 = arith.addf %6, %7 : vector<2x256xf32>
    %9 = math.sqrt %8 : vector<2x256xf32>
    %10 = vector.extract_strided_slice %1 {offsets = [0, 0, 0], sizes = [2, 1, 256], strides = [1, 1, 1]} : vector<2x8x256xf32> to vector<2x1x256xf32>
    %11 = vector.shape_cast %10 : vector<2x1x256xf32> to vector<2x256xf32>
    %c0_i32 = arith.constant 0 : i32
    %12 = vector.broadcast %c0_i32 : i32 to vector<2x256xi32>
    %13 = vector.extract_strided_slice %1 {offsets = [0, 1, 0], sizes = [2, 1, 256], strides = [1, 1, 1]} : vector<2x8x256xf32> to vector<2x1x256xf32>
    %14 = vector.shape_cast %13 : vector<2x1x256xf32> to vector<2x256xf32>
    %15 = arith.cmpf ogt, %14, %11 : vector<2x256xf32>
    %16 = arith.select %15, %14, %11 : vector<2x256xi1>, vector<2x256xf32>
    %c1_i32 = arith.constant 1 : i32
    %17 = vector.broadcast %c1_i32 : i32 to vector<2x256xi32>
    %18 = arith.select %15, %17, %12 : vector<2x256xi1>, vector<2x256xi32>
    %19 = vector.extract_strided_slice %1 {offsets = [0, 2, 0], sizes = [2, 1, 256], strides = [1, 1, 1]} : vector<2x8x256xf32> to vector<2x1x256xf32>
    %20 = vector.shape_cast %19 : vector<2x1x256xf32> to vector<2x256xf32>
    %21 = arith.cmpf ogt, %20, %16 : vector<2x256xf32>
    %22 = arith.select %21, %20, %16 : vector<2x256xi1>, vector<2x256xf32>
    %c2_i32 = arith.constant 2 : i32
    %23 = vector.broadcast %c2_i32 : i32 to vector<2x256xi32>
    %24 = arith.select %21, %23, %18 : vector<2x256xi1>, vector<2x256xi32>
    %25 = vector.extract_strided_slice %1 {offsets = [0, 3, 0], sizes = [2, 1, 256], strides = [1, 1, 1]} : vector<2x8x256xf32> to vector<2x1x256xf32>
    %26 = vector.shape_cast %25 : vector<2x1x256xf32> to vector<2x256xf32>
    %27 = arith.cmpf ogt, %26, %22 : vector<2x256xf32>
    %28 = arith.select %27, %26, %22 : vector<2x256xi1>, vector<2x256xf32>
    %c3_i32 = arith.constant 3 : i32
    %29 = vector.broadcast %c3_i32 : i32 to vector<2x256xi32>
    %30 = arith.select %27, %29, %24 : vector<2x256xi1>, vector<2x256xi32>
    %31 = vector.extract_strided_slice %1 {offsets = [0, 4, 0], sizes = [2, 1, 256], strides = [1, 1, 1]} : vector<2x8x256xf32> to vector<2x1x256xf32>
    %32 = vector.shape_cast %31 : vector<2x1x256xf32> to vector<2x256xf32>
    %33 = arith.cmpf ogt, %32, %28 : vector<2x256xf32>
    %34 = arith.select %33, %32, %28 : vector<2x256xi1>, vector<2x256xf32>
    %c4_i32 = arith.constant 4 : i32
    %35 = vector.broadcast %c4_i32 : i32 to vector<2x256xi32>
    %36 = arith.select %33, %35, %30 : vector<2x256xi1>, vector<2x256xi32>
    %37 = vector.extract_strided_slice %1 {offsets = [0, 5, 0], sizes = [2, 1, 256], strides = [1, 1, 1]} : vector<2x8x256xf32> to vector<2x1x256xf32>
    %38 = vector.shape_cast %37 : vector<2x1x256xf32> to vector<2x256xf32>
    %39 = arith.cmpf ogt, %38, %34 : vector<2x256xf32>
    %40 = arith.select %39, %38, %34 : vector<2x256xi1>, vector<2x256xf32>
    %c5_i32 = arith.constant 5 : i32
    %41 = vector.broadcast %c5_i32 : i32 to vector<2x256xi32>
    %42 = arith.select %39, %41, %36 : vector<2x256xi1>, vector<2x256xi32>
    %43 = vector.extract_strided_slice %1 {offsets = [0, 6, 0], sizes = [2, 1, 256], strides = [1, 1, 1]} : vector<2x8x256xf32> to vector<2x1x256xf32>
    %44 = vector.shape_cast %43 : vector<2x1x256xf32> to vector<2x256xf32>
    %45 = arith.cmpf ogt, %44, %40 : vector<2x256xf32>
    %46 = arith.select %45, %44, %40 : vector<2x256xi1>, vector<2x256xf32>
    %c6_i32 = arith.constant 6 : i32
    %47 = vector.broadcast %c6_i32 : i32 to vector<2x256xi32>
    %48 = arith.select %45, %47, %42 : vector<2x256xi1>, vector<2x256xi32>
    %49 = vector.extract_strided_slice %1 {offsets = [0, 7, 0], sizes = [2, 1, 256], strides = [1, 1, 1]} : vector<2x8x256xf32> to vector<2x1x256xf32>
    %50 = vector.shape_cast %49 : vector<2x1x256xf32> to vector<2x256xf32>
    %51 = arith.cmpf ogt, %50, %46 : vector<2x256xf32>
    %c7_i32 = arith.constant 7 : i32
    %52 = vector.broadcast %c7_i32 : i32 to vector<2x256xi32>
    %53 = arith.select %51, %52, %48 : vector<2x256xi1>, vector<2x256xi32>
    %54 = tpu.iota {dimensions = array<i32: 0>} : vector<8x256xi32>
    %cst = arith.constant 0.000000e+00 : f32
    %55 = vector.broadcast %cst : f32 to vector<8x256xf32>
    %56 = vector.extract_strided_slice %53 {offsets = [0, 0], sizes = [1, 256], strides = [1, 1]} : vector<2x256xi32> to vector<1x256xi32>
    %57 = vector.shape_cast %56 : vector<1x256xi32> to vector<256xi32>
    %58 = vector.shape_cast %57 : vector<256xi32> to vector<1x256xi32>
    %59 = vector.broadcast %58 : vector<1x256xi32> to vector<8x256xi32>
    %60 = arith.cmpi eq, %59, %54 : vector<8x256xi32>
    %61 = vector.extract_strided_slice %9 {offsets = [0, 0], sizes = [1, 256], strides = [1, 1]} : vector<2x256xf32> to vector<1x256xf32>
    %62 = vector.shape_cast %61 : vector<1x256xf32> to vector<256xf32>
    %63 = vector.shape_cast %62 : vector<256xf32> to vector<1x256xf32>
    %64 = vector.shape_cast %63 : vector<1x256xf32> to vector<1x256xf32>
    %65 = vector.broadcast %64 : vector<1x256xf32> to vector<8x256xf32>
    %66 = arith.select %60, %65, %55 : vector<8x256xi1>, vector<8x256xf32>
    %67 = vector.extract_strided_slice %53 {offsets = [1, 0], sizes = [1, 256], strides = [1, 1]} : vector<2x256xi32> to vector<1x256xi32>
    %68 = vector.shape_cast %67 : vector<1x256xi32> to vector<256xi32>
    %69 = vector.shape_cast %68 : vector<256xi32> to vector<1x256xi32>
    %70 = vector.broadcast %69 : vector<1x256xi32> to vector<8x256xi32>
    %71 = arith.cmpi eq, %70, %54 : vector<8x256xi32>
    %72 = vector.extract_strided_slice %9 {offsets = [1, 0], sizes = [1, 256], strides = [1, 1]} : vector<2x256xf32> to vector<1x256xf32>
    %73 = vector.shape_cast %72 : vector<1x256xf32> to vector<256xf32>
    %74 = vector.shape_cast %73 : vector<256xf32> to vector<1x256xf32>
    %75 = vector.shape_cast %74 : vector<1x256xf32> to vector<1x256xf32>
    %76 = vector.broadcast %75 : vector<1x256xf32> to vector<8x256xf32>
    %77 = arith.select %71, %76, %66 : vector<8x256xi1>, vector<8x256xf32>
    %c0_2 = arith.constant 0 : index
    %c0_3 = arith.constant 0 : index
    %c0_4 = arith.constant 0 : index
    %78 = vector.load %arg2[%c0_2, %c0_3, %c0_4] : memref<2x8x256xf32, #tpu.memory_space<vmem>>, vector<1x8x256xf32>
    %79 = vector.shape_cast %78 : vector<1x8x256xf32> to vector<8x256xf32>
    %80 = vector.shape_cast %77 : vector<8x256xf32> to vector<1x8x256xf32>
    tpu.vector_store %arg2[%c0_2, %c0_3, %c0_4], %80 {strides = array<i32>} : memref<2x8x256xf32, #tpu.memory_space<vmem>>, vector<1x8x256xf32>,
    %c1 = arith.constant 1 : index
    %c0_5 = arith.constant 0 : index
    %c0_6 = arith.constant 0 : index
    %81 = vector.load %arg2[%c1, %c0_5, %c0_6] : memref<2x8x256xf32, #tpu.memory_space<vmem>>, vector<1x8x256xf32>
    %82 = vector.shape_cast %81 : vector<1x8x256xf32> to vector<8x256xf32>
    %83 = vector.shape_cast %77 : vector<8x256xf32> to vector<1x8x256xf32>
    tpu.vector_store %arg2[%c1, %c0_5, %c0_6], %83 {strides = array<i32>} : memref<2x8x256xf32, #tpu.memory_space<vmem>>, vector<1x8x256xf32>,
    return
  }
  func.func @transform_0(%arg0: i32) -> (i32, i32, i32) {
    %c0_i32 = arith.constant 0 : i32
    %c0_i32_0 = arith.constant 0 : i32
    %c0_i32_1 = arith.constant 0 : i32
    return %c0_i32, %c0_i32_0, %arg0 : i32, i32, i32
  }
  func.func @transform_1(%arg0: i32) -> (i32, i32, i32) {
    %c0_i32 = arith.constant 0 : i32
    %c0_i32_0 = arith.constant 0 : i32
    %c0_i32_1 = arith.constant 0 : i32
    return %c0_i32, %c0_i32_0, %arg0 : i32, i32, i32
  }
}

</mosaic_0001>

<bundles_post_ra>
// kernel: tpu_custom_call.1
= control target key start
LH: loop header
LB: loop body
LE: loop exit
PB: predicated region body
PF: predicated region fallthrough
CT: control target
= control target key end

     0   :  { %s535_s0 = inlined_call_operand.vmem [shape: f32[2,10,256], index: 0, kind: input, shape index: {}]   ;;  %s536_s1 = inlined_call_operand.hbm [shape: f32[2,8,256], index: 1, kind: output, shape index: {}]  }
   0x1   :  { %v369_v0 = vld [vmem:[%s535_s0] sm:$0xff]  ;;  %v11_v1 = vld [vmem:[%s535_s0 + $0x10] sm:$0x3]  ;;  %v12_v8 = vld [vmem:[%s535_s0 + $0x18] sm:$0x3] }
   0x2   :  { %v377_v2 = vld [vmem:[%s535_s0 + $0x20] sm:$0xff]  ;;  %v15_v3 = vld [vmem:[%s535_s0 + $0x30] sm:$0x3]  ;;  %v17_v4 = vmul.f32 %v11_v1, %v11_v1  ;;  %v89_v5 = vrot.slane %v369_v0, 7  ;;  %v18_v10 = vmul.f32 %v12_v8, %v12_v8 }
   0x3   :  { %v91_v6 = vrot.slane %v377_v2, 7  ;;  %v19_v7 = vmul.f32 %v15_v3, %v15_v3 }
   0x4   :  { %v25_v9 = vrot.slane %v17_v4, 1  ;;  %vm97_vm0 = vcmp.gt.f32.partialorder %v369_v0, %v89_v5 }
   0x5   :  { %vm99_vm1 = vcmp.gt.f32.partialorder %v377_v2, %v91_v6 }
   0x6   :  { %6 = vsyncpa [#allocation3], 0  ;;  %v27_v11 = vrot.slane %v19_v7, 1  ;;  %v101_v12 = vsel %vm97_vm0, %v369_v0, %v89_v5  ;;  %v103_v13 = vsel %vm99_vm1, %v377_v2, %v91_v6  ;;  %v352_v14 = vmov 0   ;;  %v16_v23 = vld [vmem:[%s535_s0 + $0x38] sm:$0x3] }
   0x7   :  { %v105_v15 = vsel %vm97_vm0, 1, %v352_v14  ;;  %v392_v16 = vadd.f32 %v25_v9, %v17_v4  ;;  %v107_v17 = vsel %vm99_vm1, 1, %v352_v14  ;;  %v113_v18 = vrot.slane %v101_v12, 7  ;;  %v407_v24 = vld [vmem:[%s535_s0 + $0x8] sm:$0xff]  ;;  %s302_s25 = sshll.u32 %s536_s1, 4  ;;  %s354_s26 = smov 256   ;;  %s303_s25 = int_to_ptr.hbm [resolvable:$true] %s302_s25 }
   0x8   :  { %v115_v19 = vrot.slane %v103_v13, 7  ;;  %v395_v20 = vadd.f32 %v27_v11, %v19_v7  ;;  %v129_v21 = vrot.slane %v105_v15, 7  ;;  %v131_v22 = vrot.slane %v107_v17, 7  ;;  %v432_v55 = vld [vmem:[%s535_s0 + $0x28] sm:$0xff]  ;;  %s353_s0 = smov [#allocation2]   ;;  %s355_s27 = smov 16  }
   0x9   :  { %318 = vrsqrt.f32 %v392_v16  ;;  %vm121_vm2 = vcmp.gt.f32.partialorder %v369_v0, %v113_v18  ;;  %v20_v25 = vmul.f32 %v16_v23, %v16_v23  ;;  %v26_v26 = vrot.slane %v18_v10, 1  ;;  %s300_s22 = sshll.u32 %s353_s0, 4  ;;  %s301_s22 = int_to_ptr.vmem [resolvable:$true] %s300_s22 }
   0xa   :  { %320 = vrsqrt.f32 %v395_v20  ;;  %vm123_vm3 = vcmp.gt.f32.partialorder %v377_v2, %v115_v19  ;;  %v125_v27 = vsel %vm121_vm2, %v369_v0, %v113_v18  ;;  %v133_v29 = vsel %vm121_vm2, 2, %v129_v21 }
   0xb   :  { %v127_v28 = vsel %vm123_vm3, %v377_v2, %v115_v19  ;;  %v135_v30 = vsel %vm123_vm3, 2, %v131_v22  ;;  %v141_v31 = vrot.slane %v125_v27, 7  ;;  %v157_v33 = vrot.slane %v133_v29, 7 }
   0xc   :  { %v143_v32 = vrot.slane %v127_v28, 7  ;;  %v159_v34 = vrot.slane %v135_v30, 7  ;;  %v47_v35 = vand.u32 2147483648, %v392_v16  ;;  %v273_v36 = vlaneseq }
   0xd   :  { %v412_v37 = vadd.f32 %v26_v26, %v18_v10  ;;  %v90_v38 = vrot.slane %v407_v24, 7  ;;  %v71_v40 = vand.u32 2147483648, %v395_v20  ;;  %vm149_vm4 = vcmp.gt.f32.partialorder %v369_v0, %v141_v31 }
   0xe   :  { %vm151_vm5 = vcmp.gt.f32.partialorder %v377_v2, %v143_v32  ;;  %v28_v41 = vrot.slane %v20_v25, 1  ;;  %v153_v44 = vsel %vm149_vm4, %v369_v0, %v141_v31  ;;  %v161_v46 = vsel %vm149_vm4, 3, %v157_v33 }
   0xf   :  { %v319_v39 = vpop.eup %318  ;;  %v155_v45 = vsel %vm151_vm5, %v377_v2, %v143_v32  ;;  %vm44_vm6 = vcmp.eq.f32.partialorder %v392_v16, inf  ;;  %v163_v48 = vsel %vm151_vm5, 3, %v159_v34  ;;  %v169_v49 = vrot.slane %v153_v44, 7 }
  0x10   :  { %v321_v42 = vpop.eup %320  ;;  %v38_v43 = vmul.f32 %v319_v39, %v392_v16  ;;  %v171_v50 = vrot.slane %v155_v45, 7  ;;  %vm46_vm7 = vcmp.eq.f32.partialorder %v392_v16, 0.0  ;;  %vm68_vm8 = vcmp.eq.f32.partialorder %v395_v20, inf }
  0x11   :  { %v62_v47 = vmul.f32 %v321_v42, %v395_v20  ;;  %v185_v52 = vrot.slane %v161_v46, 7  ;;  %v187_v53 = vrot.slane %v163_v48, 7  ;;  %322 = vrsqrt.f32 %v412_v37 }
  0x12   :  { %v39_v51 = vmul.f32 %v319_v39, %v38_v43  ;;  %vm70_vm9 = vcmp.eq.f32.partialorder %v395_v20, 0.0  ;;  %vm177_vm10 = vcmp.gt.f32.partialorder %v369_v0, %v169_v49  ;;  %vm179_vm11 = vcmp.gt.f32.partialorder %v377_v2, %v171_v50 }
  0x13   :  { %v63_v54 = vmul.f32 %v321_v42, %v62_v47  ;;  %v434_v56 = vadd.f32 %v28_v41, %v20_v25  ;;  %v181_v58 = vsel %vm177_vm10, %v369_v0, %v169_v49  ;;  %v183_v59 = vsel %vm179_vm11, %v377_v2, %v171_v50 }
  0x14   :  { %v40_v57 = vmul.f32 0.5, %v39_v51  ;;  %v189_v60 = vsel %vm177_vm10, 4, %v185_v52  ;;  %v191_v62 = vsel %vm179_vm11, 4, %v187_v53  ;;  %v197_v63 = vrot.slane %v181_v58, 7 }
  0x15   :  { %v64_v61 = vmul.f32 0.5, %v63_v54  ;;  %v199_v1 = vrot.slane %v183_v59, 7  ;;  %v213_v4 = vrot.slane %v189_v60, 7  ;;  %v215_v5 = vrot.slane %v191_v62, 7 }
  0x16   :  { %v41_v3 = vsub.f32 1.5, %v40_v57  ;;  %v92_v6 = vrot.slane %v432_v55, 7  ;;  %vm205_vm12 = vcmp.gt.f32.partialorder %v369_v0, %v197_v63  ;;  %vm444_vm14 = vcmp.gt.f32.partialorder %v407_v24, %v90_v38 }
  0x17   :  { %v65_v7 = vsub.f32 1.5, %v64_v61  ;;  %vm207_vm13 = vcmp.gt.f32.partialorder %v377_v2, %v199_v1  ;;  %v448_v9 = vpop.eup %322  ;;  %v209_v11 = vsel %vm205_vm12, %v369_v0, %v197_v63  ;;  %v217_v13 = vsel %vm205_vm12, 5, %v213_v4 }
  0x18   :  { %v42_v10 = vmul.f32 %v319_v39, %v41_v3  ;;  %v211_v12 = vsel %vm207_vm13, %v377_v2, %v199_v1  ;;  %v219_v17 = vsel %vm207_vm13, 5, %v215_v5  ;;  %v225_v18 = vrot.slane %v209_v11, 7 }
  0x19   :  { %v66_v15 = vmul.f32 %v321_v42, %v65_v7  ;;  %v227_v19 = vrot.slane %v211_v12, 7  ;;  %v241_v22 = vrot.slane %v217_v13, 7  ;;  %v243_v23 = vrot.slane %v219_v17, 7 }
  0x1a   :  { %v43_v21 = vmul.f32 %v42_v10, %v392_v16  ;;  %v50_v25 = vmul.f32 %v448_v9, %v412_v37  ;;  %vm233_vm15 = vcmp.gt.f32.partialorder %v369_v0, %v225_v18  ;;  %324 = vrsqrt.f32 %v434_v56 }
  0x1b   :  { %v67_v26 = vmul.f32 %v66_v15, %v395_v20  ;;  %vm235_vm0 = vcmp.gt.f32.partialorder %v377_v2, %v227_v19  ;;  %v237_v28 = vsel %vm233_vm15, %v369_v0, %v225_v18  ;;  %v245_v30 = vsel %vm233_vm15, 6, %v241_v22 }
  0x1c   :  { %v45_v27 = vsel %vm44_vm6, %v392_v16, %v43_v21  ;;  %v239_v29 = vsel %vm235_vm0, %v377_v2, %v227_v19  ;;  %v247_v33 = vsel %vm235_vm0, 6, %v243_v23  ;;  %v253_v34 = vrot.slane %v237_v28, 7 }
  0x1d   :  { %v48_v31 = vsel %vm46_vm7, %v47_v35, %v45_v27  ;;  %v69_v32 = vsel %vm68_vm8, %v395_v20, %v67_v26  ;;  %v255_v41 = vrot.slane %v239_v29, 7  ;;  %v265_v42 = vrot.slane %v245_v30, 7 }
  0x1e   :  { %v72_v39 = vsel %vm70_vm9, %v71_v40, %v69_v32  ;;  %v267_v43 = vrot.slane %v247_v33, 7  ;;  %vm261_vm1 = vcmp.gt.f32.partialorder %v369_v0, %v253_v34  ;;  %v477_v44 = vshrl.u32 %v273_v36, 7 }
  0x1f   :  { %v51_v16 = vmul.f32 %v448_v9, %v50_v25  ;;  %v102_v35 = vsel %vm444_vm14, %v407_v24, %v90_v38  ;;  %vm263_vm2 = vcmp.gt.f32.partialorder %v377_v2, %v255_v41  ;;  %v269_v20 = vsel %vm261_vm1, 7, %v265_v42 }
  0x20   :  { %v279_v40 = vperm.slane %v48_v31, 0  ;;  %v106_v45 = vsel %vm444_vm14, 1, %v352_v14  ;;  %v325_v0 = vpop.eup %324  ;;  %v271_v46 = vsel %vm263_vm2, 7, %v267_v43  ;;  %v275_v36 = vperm.slane %v269_v20, 7 }
  0x21   :  { %v287_v47 = vperm.slane %v72_v39, 0  ;;  %v52_v48 = vmul.f32 0.5, %v51_v16  ;;  %v283_v49 = vperm.slane %v271_v46, 7  ;;  %v74_v50 = vmul.f32 %v325_v0, %v434_v56 }
  0x22   :  { %vm100_vm3 = vcmp.gt.f32.partialorder %v432_v55, %v92_v6  ;;  %v114_v51 = vrot.slane %v102_v35, 7  ;;  %vm277_vm4 = vcmp.eq.s32.totalorder %v275_v36, %v477_v44  ;;  %v130_v59 = vrot.slane %v106_v45, 7 }
  0x23   :  { %v104_v2 = vsel %vm100_vm3, %v432_v55, %v92_v6  ;;  %v108_v38 = vsel %vm100_vm3, 1, %v352_v14  ;;  %v281_v52 = vsel %vm277_vm4, %v279_v40, 0.0  ;;  %vm285_vm5 = vcmp.eq.s32.totalorder %v283_v49, %v477_v44 }
  0x24   :  { %v75_v53 = vmul.f32 %v325_v0, %v74_v50  ;;  %v116_v54 = vrot.slane %v104_v2, 7  ;;  %v289_v57 = vsel %vm285_vm5, %v287_v47, %v281_v52  ;;  %v53_v58 = vsub.f32 1.5, %v52_v48 }
  0x25   :  { %vm122_vm6 = vcmp.gt.f32.partialorder %v407_v24, %v114_v51  ;;  %291 = vst [vmem:[#allocation2] sm:$0xff] %v289_v57  ;;  %v132_v62 = vrot.slane %v108_v38, 7  ;;  %vm56_vm12 = vcmp.eq.f32.partialorder %v412_v37, inf  ;;  %vm58_vm13 = vcmp.eq.f32.partialorder %v412_v37, 0.0 }
  0x26   :  { %v76_v60 = vmul.f32 0.5, %v75_v53  ;;  %vm124_vm7 = vcmp.gt.f32.partialorder %v432_v55, %v116_v54  ;;  %v126_v61 = vsel %vm122_vm6, %v407_v24, %v114_v51  ;;  %294 = vst [vmem:[#allocation2 + $0x10] sm:$0xff] %v289_v57  ;;  %v134_v63 = vsel %vm122_vm6, 2, %v130_v59 }
  0x27   :  { %v128_v14 = vsel %vm124_vm7, %v432_v55, %v116_v54  ;;  %v142_v1 = vrot.slane %v126_v61, 7  ;;  %v136_v3 = vsel %vm124_vm7, 2, %v132_v62  ;;  %v158_v5 = vrot.slane %v134_v63, 7 }
  0x28   :  { %v144_v4 = vrot.slane %v128_v14, 7  ;;  %v77_v6 = vsub.f32 1.5, %v76_v60  ;;  %v160_v7 = vrot.slane %v136_v3, 7  ;;  %v54_v8 = vmul.f32 %v448_v9, %v53_v58 }
  0x29   :  { %vm150_vm8 = vcmp.gt.f32.partialorder %v407_v24, %v142_v1  ;;  %v59_v31 = vand.u32 2147483648, %v412_v37  ;;  %vm80_vm14 = vcmp.eq.f32.partialorder %v434_v56, inf  ;;  %v83_v35 = vand.u32 2147483648, %v434_v56 }
  0x2a   :  { %vm152_vm9 = vcmp.gt.f32.partialorder %v432_v55, %v144_v4  ;;  %v154_v10 = vsel %vm150_vm8, %v407_v24, %v142_v1  ;;  %v162_v12 = vsel %vm150_vm8, 3, %v158_v5  ;;  %v78_v21 = vmul.f32 %v325_v0, %v77_v6 }
  0x2b   :  { %v156_v11 = vsel %vm152_vm9, %v432_v55, %v144_v4  ;;  %v164_v13 = vsel %vm152_vm9, 3, %v160_v7  ;;  %v170_v15 = vrot.slane %v154_v10, 7  ;;  %v186_v18 = vrot.slane %v162_v12, 7 }
  0x2c   :  { %v172_v17 = vrot.slane %v156_v11, 7  ;;  %v188_v19 = vrot.slane %v164_v13, 7  ;;  %v55_v22 = vmul.f32 %v54_v8, %v412_v37  ;;  %v79_v32 = vmul.f32 %v78_v21, %v434_v56 }
  0x2d   :  { %vm178_vm10 = vcmp.gt.f32.partialorder %v407_v24, %v170_v15  ;;  %vm82_vm1 = vcmp.eq.f32.partialorder %v434_v56, 0.0 }
  0x2e   :  { %vm180_vm11 = vcmp.gt.f32.partialorder %v432_v55, %v172_v17  ;;  %v182_v9 = vsel %vm178_vm10, %v407_v24, %v170_v15  ;;  %v190_v23 = vsel %vm178_vm10, 4, %v186_v18  ;;  %v57_v33 = vsel %vm56_vm12, %v412_v37, %v55_v22 }
  0x2f   :  { %v184_v25 = vsel %vm180_vm11, %v432_v55, %v172_v17  ;;  %v192_v26 = vsel %vm180_vm11, 4, %v188_v19  ;;  %v198_v27 = vrot.slane %v182_v9, 7  ;;  %v214_v29 = vrot.slane %v190_v23, 7 }
  0x30   :  { %v200_v28 = vrot.slane %v184_v25, 7  ;;  %v216_v30 = vrot.slane %v192_v26, 7  ;;  %v81_v45 = vsel %vm80_vm14, %v434_v56, %v79_v32  ;;  %v60_v0 = vsel %vm58_vm13, %v59_v31, %v57_v33 }
  0x31   :  { %vm206_vm15 = vcmp.gt.f32.partialorder %v407_v24, %v198_v27  ;;  %v84_v51 = vsel %vm82_vm1, %v83_v35, %v81_v45  ;;  %v280_v37 = vperm.slane %v60_v0, 0 }
  0x32   :  { %vm208_vm0 = vcmp.gt.f32.partialorder %v432_v55, %v200_v28  ;;  %v210_v34 = vsel %vm206_vm15, %v407_v24, %v198_v27  ;;  %v218_v39 = vsel %vm206_vm15, 5, %v214_v29  ;;  %v288_v54 = vperm.slane %v84_v51, 0 }
  0x33   :  { %v212_v41 = vsel %vm208_vm0, %v432_v55, %v200_v28  ;;  %v220_v42 = vsel %vm208_vm0, 5, %v216_v30  ;;  %v226_v43 = vrot.slane %v210_v34, 7  ;;  %v242_v16 = vrot.slane %v218_v39, 7 }
  0x34   :  { %v228_v20 = vrot.slane %v212_v41, 7  ;;  %v244_v40 = vrot.slane %v220_v42, 7 }
  0x35   :  { %vm234_vm2 = vcmp.gt.f32.partialorder %v407_v24, %v226_v43 }
  0x36   :  { %vm236_vm3 = vcmp.gt.f32.partialorder %v432_v55, %v228_v20  ;;  %v238_v46 = vsel %vm234_vm2, %v407_v24, %v226_v43  ;;  %v246_v36 = vsel %vm234_vm2, 6, %v242_v16 }
  0x37   :  { %v240_v47 = vsel %vm236_vm3, %v432_v55, %v228_v20  ;;  %v248_v48 = vsel %vm236_vm3, 6, %v244_v40  ;;  %v254_v49 = vrot.slane %v238_v46, 7  ;;  %v266_v50 = vrot.slane %v246_v36, 7 }
  0x38   :  { %v256_v2 = vrot.slane %v240_v47, 7  ;;  %v268_v38 = vrot.slane %v248_v48, 7 }
  0x39   :  { %vm262_vm4 = vcmp.gt.f32.partialorder %v407_v24, %v254_v49 }
  0x3a   :  { %vm264_vm5 = vcmp.gt.f32.partialorder %v432_v55, %v256_v2  ;;  %v270_v56 = vsel %vm262_vm4, 7, %v266_v50 }
  0x3b   :  { %v272_v52 = vsel %vm264_vm5, 7, %v268_v38  ;;  %v276_v53 = vperm.slane %v270_v56, 7 }
  0x3c   :  { %v284_v57 = vperm.slane %v272_v52, 7 }
  0x3d   :  { %vm278_vm6 = vcmp.eq.s32.totalorder %v276_v53, %v477_v44 }
  0x3e   :  { %v282_v58 = vsel %vm278_vm6, %v280_v37, 0.0  ;;  %vm286_vm7 = vcmp.eq.s32.totalorder %v284_v57, %v477_v44 }
  0x3f   :  { %v290_v24 = vsel %vm286_vm7, %v288_v54, %v282_v58 }
  0x40   :  { %292 = vst [vmem:[#allocation2 + $0x8] sm:$0xff] %v290_v24 }
  0x41   :  { %295 = vst [vmem:[#allocation2 + $0x18] sm:$0xff] %v290_v24 }
  0x42   :  { %308 = dma.vmem_to_hbm [thread:$0]  %s301_s22, 512, %s303_s25, [#allocation3], %s354_s26, %s354_s26, %s355_s27  }
  0x43   :  { %350 = dma.done.wait [#allocation3], 512  }
  0x44   :  { %351 = vsyncadd [#allocation3], 4294966784 }
  0x45   :  { %313 = vsyncpa [#allocation3], 1 }

</bundles_post_ra>
